<compile_context>
chip_gen: v7x
topology: tpu7x:2x2x1
jax: 0.10.0
libtpu: 0.0.40
codegen_flags: <defaults>
</compile_context>

<pallas_src>
import numpy as np
import jax
import jax.numpy as jnp
from jax.experimental import pallas as pl
from jax.experimental.pallas import tpu as pltpu


# ----------------------------------------------------------------------------- helpers
def _whole_block(a):
    """Whole-array VMEM block for grid=(1,) kernels."""
    nd = a.ndim
    return pl.BlockSpec(a.shape, lambda *_, nd=nd: (0,) * nd)


def _row_tile(n):
    """Largest 'nice' row tile: full array at small N, 512/256/128 when they divide N."""
    for t in (512, 256, 128):
        if n > t and n % t == 0:
            return t
    return n


# 64 MiB is safe on every generation (v5e/v6e: 128 MiB physical, v7x: 64 MiB).
_VMEM_LIMIT = 64 * 1024 * 1024


def _cparams(semantics):
    return pltpu.CompilerParams(dimension_semantics=semantics,
                                vmem_limit_bytes=_VMEM_LIMIT)


# ----------------------------------------------------------------------------- kernel 1
# entropy "V" term:  x*(L@x) - x*(A@x) + A@(x*x) == deg*x^2 - 2*x*(A@x) + A@(x*x)
# One fused MXU pass per row tile:  Y = A_rows @ [x, x*x, 1]
def _entropy_v_kernel(a_ref, x_ref, xcat_ref, v_ref):
    A_rows = a_ref[...]                  # (tm, N)   bf16 (0/1 exact)
    x = x_ref[...]                       # (tm, F)   f32
    xcat = xcat_ref[...]                 # (N, 2F+1) bf16 = [x, x*x, 1]
    F = x.shape[1]
    y = jnp.dot(A_rows, xcat, preferred_element_type=jnp.float32)   # (tm, 2F+1) f32
    Ax = y[:, :F]
    Axx = y[:, F:2 * F]
    deg = y[:, 2 * F:]                   # exact: f32 accumulation of 0/1 products
    V = deg * x * x - 2.0 * x * Ax + Axx
    # TODO(synk): (tm,1) output lowers to masked vst; a lane-dense (1,N) slab
    # would shave store overhead but needs an in-kernel transpose.
    v_ref[...] = jnp.sqrt(jnp.sum(V * V, axis=1, keepdims=True))


def entropy_v(x, A_bf16):
    N, F = x.shape
    tm = _row_tile(N)
    xcat = jnp.concatenate([x, x * x, jnp.ones((N, 1), x.dtype)], axis=1)
    xcat = xcat.astype(jnp.bfloat16)
    return pl.pallas_call(
        _entropy_v_kernel,
        grid=(N // tm,),
        in_specs=[
            pl.BlockSpec((tm, N), lambda i: (i, 0)),         # A rows stream through VMEM
            pl.BlockSpec((tm, F), lambda i: (i, 0)),
            pl.BlockSpec((N, 2 * F + 1), lambda i: (0, 0)),  # resident RHS (fetched once)
        ],
        out_specs=pl.BlockSpec((tm, 1), lambda i: (i, 0)),
        out_shape=jax.ShapeDtypeStruct((N, 1), jnp.float32),
        compiler_params=_cparams(("parallel",)),
    )(A_bf16, x, xcat)


# ----------------------------------------------------------------------------- kernel 2
# Fused: gc1 -> gc2 -> gc3 -> sigmoid, plus the loss tail (-e^T p + p^T A p).
# A is DMA'd once; the (N, hidden) activations never leave VMEM.
def _gin_stack_loss_kernel(e_ref, a_ref, *refs):
    (w1a, b1a, w2a, b2a, w3a, b3a,
     w1b, b1b, w2b, b2b, w3b, b3b,
     w1c, b1c, w2c, b2c, w3cT, b3c) = refs[:-2]
    p_ref, loss_ref = refs[-2], refs[-1]

    e = e_ref[...]                       # (N, 1) f32
    A = a_ref[...]                       # (N, N) bf16

    def agg(h):                          # GINConv (eps = 0): self + neighbor sum
        return h + jnp.dot(A, h.astype(jnp.bfloat16),
                           preferred_element_type=jnp.float32)

    def dense(h, w, b):                  # MXU dense layer: bf16 operands, f32 acc
        return jnp.dot(h.astype(jnp.bfloat16), w[...],
                       preferred_element_type=jnp.float32) + b[...]

    # gc1: MLP(1, H, H) — fc1 has K=1, so it is an outer product on the VPU (exact f32).
    g = agg(e)                                               # (N, 1)
    h = jnp.maximum(g * w1a[...] + b1a[...], 0.0)            # (N,1)*(1,H) broadcast
    h = jnp.maximum(dense(h, w2a, b2a), 0.0)
    h = dense(h, w3a, b3a)

    # gc2: MLP(H, H, H)
    g = agg(h)
    h = jnp.maximum(dense(g, w1b, b1b), 0.0)
    h = jnp.maximum(dense(h, w2b, b2b), 0.0)
    h = dense(h, w3b, b3b)

    # gc3: MLP(H, H, 1) — fc3 has output width 1, so it is a lane reduction (exact f32).
    g = agg(h)
    h = jnp.maximum(dense(g, w1c, b1c), 0.0)
    h = jnp.maximum(dense(h, w2c, b2c), 0.0)
    h = jnp.sum(h * w3cT[...], axis=1, keepdims=True) + b3c[...]

    p = 1.0 / (1.0 + jnp.exp(-h))        # sigmoid, (N, 1) f32
    p_ref[...] = p

    # loss tail: -(e^T p) + p^T A p   (scalar routed through SMEM, no masked (1,1) vst)
    Ap = jnp.dot(A, p.astype(jnp.bfloat16), preferred_element_type=jnp.float32)
    loss_ref[0, 0] = jnp.sum(p * Ap) - jnp.sum(e * p)


def gin_stack_with_loss(entropies, A_bf16, params):
    N = entropies.shape[0]
    bf = jnp.bfloat16
    w1a, b1a, w2a, b2a, w3a, b3a = params["gc1"]
    w1b, b1b, w2b, b2b, w3b, b3b = params["gc2"]
    w1c, b1c, w2c, b2c, w3c, b3c = params["gc3"]
    # Pre-cast the MXU (H x H) weights to bf16; keep the VPU/XLU weights
    # (gc1.fc1 outer product, gc3.fc3 reduction, all biases) in f32.
    weights = (
        w1a, b1a, w2a.astype(bf), b2a, w3a.astype(bf), b3a,
        w1b.astype(bf), b1b, w2b.astype(bf), b2b, w3b.astype(bf), b3b,
        w1c.astype(bf), b1c, w2c.astype(bf), b2c, w3c.T, b3c,   # w3c passed as (1, H)
    )
    args = (entropies, A_bf16) + weights
    # TODO(synk): kept as one fused launch (A DMA'd once, activations resident).
    # Row-tiling would require splitting per GIN layer (each layer needs the
    # full h for aggregation); do that once N*N*2B approaches the VMEM budget.
    p, loss_tail = pl.pallas_call(
        _gin_stack_loss_kernel,
        grid=(1,),
        in_specs=[_whole_block(a) for a in args],
        out_specs=(
            pl.BlockSpec((N, 1), lambda i: (0, 0)),
            pl.BlockSpec(memory_space=pltpu.MemorySpace.SMEM),
        ),
        out_shape=(
            jax.ShapeDtypeStruct((N, 1), jnp.float32),
            jax.ShapeDtypeStruct((1, 1), jnp.float32),
        ),
        compiler_params=_cparams(("arbitrary",)),
    )(*args)
    return p, loss_tail[0, 0]


# ----------------------------------------------------------------------------- kernel 3
# (1 - I) * clamp(A@A + (A@A)@A, 0, 1), row-tiled; full A resident, fetched once.
def _adj_pow_kernel(a_ref, o_ref):
    tm = o_ref.shape[0]
    N = a_ref.shape[0]
    row0 = pl.multiple_of(pl.program_id(0) * tm, tm)
    A = a_ref[...]                                           # (N, N) bf16, resident
    A_rows = a_ref[pl.ds(row0, tm), :]                       # (tm, N)
    A2 = jnp.dot(A_rows, A, preferred_element_type=jnp.float32)      # exact small ints
    # Fold A3 into the same sum; the bf16 round-trip rounds path counts > 256
    # but preserves positivity, which is all clip(., 0, 1) needs.
    S = A2 + jnp.dot(A2.astype(jnp.bfloat16), A, preferred_element_type=jnp.float32)
    S = jnp.clip(S, 0.0, 1.0)
    row = row0 + jax.lax.broadcasted_iota(jnp.int32, (tm, N), 0)
    col = jax.lax.broadcasted_iota(jnp.int32, (tm, N), 1)
    o_ref[...] = jnp.where(row == col, 0.0, S).astype(o_ref.dtype)   # diag-zero, exact {0,1}


def adj_powers(A_bf16):
    N = A_bf16.shape[0]
    tm = _row_tile(N)
    # TODO(synk): v5e/v6e could run this int8 x int8 -> int32 (2x MXU rate) and
    # v7x fp8; kept bf16 for cross-generation portability.
    return pl.pallas_call(
        _adj_pow_kernel,
        grid=(N // tm,),
        in_specs=[pl.BlockSpec((N, N), lambda i: (0, 0))],   # constant map: fetched once
        out_specs=pl.BlockSpec((tm, N), lambda i: (i, 0)),
        out_shape=jax.ShapeDtypeStruct((N, N), jnp.bfloat16),
        compiler_params=_cparams(("parallel",)),
    )(A_bf16)


# ----------------------------------------------------------------------------- params
def linear_params(key, in_dim, out_dim):
    # deterministic nn.Linear-style init: U(-1/sqrt(fan_in), 1/sqrt(fan_in))
    k1, k2 = jax.random.split(key)
    bound = 1.0 / float(np.sqrt(in_dim))
    W = jax.random.uniform(k1, (in_dim, out_dim), jnp.float32, -bound, bound)
    b = jax.random.uniform(k2, (1, out_dim), jnp.float32, -bound, bound)
    return W, b


def init_mlp_params(key, input_dim, hidden_dim, output_dim):
    k1, k2, k3 = jax.random.split(key, 3)
    w1, b1 = linear_params(k1, input_dim, hidden_dim)
    w2, b2 = linear_params(k2, hidden_dim, hidden_dim)
    w3, b3 = linear_params(k3, hidden_dim, output_dim)
    return (w1, b1, w2, b2, w3, b3)


# ----------------------------------------------------------------------------- greedy
def conditional_expectation(entropies, probabilities, A, threshold, gamma):
    # Greedy, order-dependent sequential selection -> pure host numpy.
    # TODO(synk): inherently sequential / data-dependent; no clean Pallas mapping.
    e = np.asarray(entropies, dtype=np.float64)[:, 0]
    p = np.asarray(probabilities, dtype=np.float64)[:, 0]
    A_np = np.asarray(A, dtype=np.float64)
    thr = float(threshold)
    g = float(gamma)

    order = np.argsort(-p)              # descending probability, like torch.sort
    dummy = p.copy()
    selected, rejected = set(), set()
    for node_index in order.tolist():
        neighbors = np.where(A_np[node_index] == 1.0)[0]
        if neighbors.size == 0:
            selected.add(node_index)
            continue
        if node_index not in rejected and node_index not in selected:
            s = dummy.copy()
            s[node_index] = 1.0
            s[neighbors] = 0.0
            cand_loss = g - float(e @ s) + float(s @ (A_np @ s))
            if cand_loss <= thr:
                selected.add(node_index)
                rejected.update(neighbors.tolist())
                dummy[node_index] = 1.0
                dummy[neighbors] = 0.0
    return sorted(selected)


# ----------------------------------------------------------------------------- forward
def mewispool_forward(x, edge_index, batch, params, num_graphs):
    N = batch.shape[0]

    if edge_index.shape[1] != 0:
        src, dst = edge_index[0], edge_index[1]
        A = jnp.zeros((N, N), jnp.float32).at[src, dst].set(1.0)
        A_bf16 = A.astype(jnp.bfloat16)                    # exact: entries are 0/1

        # --- entropies (kernel 1 + segment softmax glue) ---
        Vn = entropy_v(x, A_bf16)[:, 0]
        seg_max = jax.ops.segment_max(Vn, batch, num_segments=num_graphs)
        ev = jnp.exp(Vn - seg_max[batch])
        seg_sum = jax.ops.segment_sum(ev, batch, num_segments=num_graphs)
        P = ev / seg_sum[batch]
        P = jnp.where(P == 0.0, P + 1.0, P)
        entropies = (-P * jnp.log(P))[:, None]
    else:
        A = jnp.zeros((N, N), jnp.float32)
        A_bf16 = A.astype(jnp.bfloat16)
        norm = jnp.linalg.norm(x, axis=1, keepdims=True)
        # reference computes norm / norm (== 1, but 0/0 = NaN for all-zero rows);
        # guard that case explicitly.
        entropies = jnp.ones_like(norm)

    # --- fused GIN stack + sigmoid + loss terms (kernel 2, one launch) ---
    probabilities, loss_tail = gin_stack_with_loss(entropies, A_bf16, params)
    gamma = jnp.sum(entropies)
    loss = gamma + loss_tail

    # Dispatch the O(N^3) adjacency-power kernel BEFORE the host greedy loop so
    # the TPU computes it while the host runs the serial selection.
    adj_full = adj_powers(A_bf16)

    # --- greedy MEWIS selection (host, numpy only) ---
    mewis = conditional_expectation(
        np.asarray(entropies), np.asarray(probabilities), np.asarray(A),
        float(loss), float(gamma))

    # --- graph reconstruction (gathers) ---
    # TODO(synk): for large N compute only the pooled block
    #   clip(A[mewis,:]@A[:,mewis] + (A[mewis,:]@A)@A[:,mewis], 0, 1)
    # instead of the full (N,N) powers (O(kN^2) vs O(N^3)).
    mewis_idx = jnp.asarray(np.asarray(mewis, dtype=np.int32).reshape(-1))
    x_pooled = x[mewis_idx]
    adj_pooled = adj_full[mewis_idx][:, mewis_idx].astype(jnp.float32)

    # --- to_edge_index (dynamic-length where -> host) ---
    r1, r2 = np.where(np.asarray(adj_pooled) > 0)
    edge_index_pooled = jnp.asarray(np.stack([r1, r2], axis=0).astype(np.int32))
    batch_pooled = batch[mewis_idx]

    return x_pooled, edge_index_pooled, batch_pooled, loss, mewis


# ----------------------------------------------------------------------------- main
if __name__ == "__main__":
    key = jax.random.PRNGKey(0)
    kx, k1, k2, k3 = jax.random.split(key, 4)

    N, F, hidden_dim = 16, 8, 32
    num_graphs = 2

    x = jax.random.normal(kx, (N, F), jnp.float32)
    batch = jnp.array([0] * 8 + [1] * 8, dtype=jnp.int32)

    # two ring graphs of 8 nodes each, undirected (both directions in edge_index)
    edges = []
    for g in range(num_graphs):
        base = g * 8
        for i in range(8):
            a, b = base + i, base + (i + 1) % 8
            edges.append((a, b))
            edges.append((b, a))
    edge_index = jnp.asarray(np.array(edges, dtype=np.int32).T)   # (2, 32)

    params = {
        "gc1": init_mlp_params(k1, 1, hidden_dim, hidden_dim),
        "gc2": init_mlp_params(k2, hidden_dim, hidden_dim, hidden_dim),
        "gc3": init_mlp_params(k3, hidden_dim, hidden_dim, 1),
    }

    x_pooled, edge_index_pooled, batch_pooled, loss, mewis = mewispool_forward(
        x, edge_index, batch, params, num_graphs
    )
    jax.block_until_ready((x_pooled, edge_index_pooled, batch_pooled, loss))
    print("KERNEL_OK")
</pallas_src>

<mosaic_0001>
module attributes {stable_mosaic.version = 11 : i64} {
  func.func @_entropy_v_kernel(%arg0: i32, %arg1: memref<16x16xbf16, #tpu.memory_space<vmem>>, %arg2: memref<16x8xf32, #tpu.memory_space<vmem>>, %arg3: memref<16x17xbf16, #tpu.memory_space<vmem>>, %arg4: memref<16x1xf32, #tpu.memory_space<vmem>>) attributes {dimension_semantics = [#tpu.dimension_semantics<parallel>], iteration_bounds = array<i64: 1>, scalar_prefetch = 0 : i64, scratch_operands = 0 : i64, tpu.core_type = #tpu.core_type<tc>, window_params = [{transform_indices = @transform_0, window_bounds = array<i64: 16, 16>}, {transform_indices = @transform_1, window_bounds = array<i64: 16, 8>}, {pipeline_mode = #tpu.pipeline_mode<synchronous>, transform_indices = @transform_2, window_bounds = array<i64: 16, 17>}, {transform_indices = @transform_3, window_bounds = array<i64: 16, 1>}]} {
    %c0 = arith.constant 0 : index
    %c0_0 = arith.constant 0 : index
    %0 = vector.load %arg1[%c0, %c0_0] : memref<16x16xbf16, #tpu.memory_space<vmem>>, vector<16x16xbf16>
    %c0_1 = arith.constant 0 : index
    %c0_2 = arith.constant 0 : index
    %1 = vector.load %arg2[%c0_1, %c0_2] : memref<16x8xf32, #tpu.memory_space<vmem>>, vector<16x8xf32>
    %c0_3 = arith.constant 0 : index
    %c0_4 = arith.constant 0 : index
    %2 = vector.load %arg3[%c0_3, %c0_4] : memref<16x17xbf16, #tpu.memory_space<vmem>>, vector<16x17xbf16>
    %cst = arith.constant dense<0.000000e+00> : vector<16x17xf32>
    %3 = tpu.matmul %0, %2, %cst {dimension_numbers = #tpu.dot_dimension_numbers<[1], [0], [0], [1], [0, 0, 1, 1], [], []>} : vector<16x16xbf16>, vector<16x17xbf16>, vector<16x17xf32> -> vector<16x17xf32>
    %4 = vector.extract_strided_slice %3 {offsets = [0, 0], sizes = [16, 8], strides = [1, 1]} : vector<16x17xf32> to vector<16x8xf32>
    %5 = vector.extract_strided_slice %3 {offsets = [0, 8], sizes = [16, 8], strides = [1, 1]} : vector<16x17xf32> to vector<16x8xf32>
    %6 = vector.extract_strided_slice %3 {offsets = [0, 16], sizes = [16, 1], strides = [1, 1]} : vector<16x17xf32> to vector<16x1xf32>
    %7 = vector.broadcast %6 : vector<16x1xf32> to vector<16x8xf32>
    %8 = arith.mulf %7, %1 : vector<16x8xf32>
    %9 = arith.mulf %8, %1 : vector<16x8xf32>
    %cst_5 = arith.constant 2.000000e+00 : f32
    %10 = vector.broadcast %cst_5 : f32 to vector<16x8xf32>
    %11 = arith.mulf %10, %1 : vector<16x8xf32>
    %12 = arith.mulf %11, %4 : vector<16x8xf32>
    %13 = arith.subf %9, %12 : vector<16x8xf32>
    %14 = arith.addf %13, %5 : vector<16x8xf32>
    %15 = arith.mulf %14, %14 : vector<16x8xf32>
    %cst_6 = arith.constant dense<0.000000e+00> : vector<16xf32>
    %16 = vector.multi_reduction <add>, %15, %cst_6 [1] : vector<16x8xf32> to vector<16xf32>
    %17 = vector.shape_cast %16 : vector<16xf32> to vector<16x1xf32>
    %18 = math.sqrt %17 : vector<16x1xf32>
    %c0_7 = arith.constant 0 : index
    %c0_8 = arith.constant 0 : index
    %19 = vector.load %arg4[%c0_7, %c0_8] : memref<16x1xf32, #tpu.memory_space<vmem>>, vector<16x1xf32>
    tpu.vector_store %arg4[%c0_7, %c0_8], %18 {strides = array<i32>} : memref<16x1xf32, #tpu.memory_space<vmem>>, vector<16x1xf32>,
    return
  }
  func.func @transform_0(%arg0: i32) -> (i32, i32) {
    %c0_i32 = arith.constant 0 : i32
    %c0_i32_0 = arith.constant 0 : i32
    return %arg0, %c0_i32 : i32, i32
  }
  func.func @transform_1(%arg0: i32) -> (i32, i32) {
    %c0_i32 = arith.constant 0 : i32
    %c0_i32_0 = arith.constant 0 : i32
    return %arg0, %c0_i32 : i32, i32
  }
  func.func @transform_2(%arg0: i32) -> (i32, i32) {
    %c0_i32 = arith.constant 0 : i32
    %c0_i32_0 = arith.constant 0 : i32
    %c0_i32_1 = arith.constant 0 : i32
    return %c0_i32, %c0_i32_0 : i32, i32
  }
  func.func @transform_3(%arg0: i32) -> (i32, i32) {
    %c0_i32 = arith.constant 0 : i32
    %c0_i32_0 = arith.constant 0 : i32
    return %arg0, %c0_i32 : i32, i32
  }
}

</mosaic_0001>

<bundles_post_ra>
// kernel: tpu_custom_call.1
= control target key start
LH: loop header
LB: loop body
LE: loop exit
PB: predicated region body
PF: predicated region fallthrough
CT: control target
= control target key end

     0   :  { %8 = vsyncpa [#allocation3], 0  ;;  %s401_s0 = inlined_call_operand.hbm [shape: bf16[16,16], index: 0, kind: input, shape index: {}]   ;;  %s402_s1 = inlined_call_operand.hbm [shape: f32[16,8], index: 1, kind: input, shape index: {}]   ;;  %s403_s2 = inlined_call_operand.hbm [shape: bf16[16,17], index: 2, kind: input, shape index: {}]   ;;  %s404_s3 = inlined_call_operand.hbm [shape: f32[16,1], index: 3, kind: output, shape index: {}]  }
   0x1   :  { %9 = vsyncpa [#allocation6], 0 }
   0x2   :  { %10 = vsyncpa [#allocation4], 0  ;;  %s315_s12 = smov [#allocation5]   ;;  %s221_s16 = scalar_lea.hbm %s402_s1, 256 }
   0x3   :  { %s28_s13 = sshll.u32 %s315_s12, 4  ;;  %p222_p0 = scmp.ne.s32.totalorder %s402_s1, %s221_s16  ;;  %s29_s13 = int_to_ptr.vmem [resolvable:$true] %s28_s13 }
   0x4   :  { %p225_p1 = scmp.lt.u32.totalorder %s221_s16, %s402_s1 }
   0x6   :  { %p227_p2 = pnand %p225_p1, %p222_p0 }
   0x8   :  { %230 = shalt.err (!%p227_p2)
}
   0x9   :  { %s231_s21 = scalar_lea.vmem %s29_s13, 256  ;;  %p236_p4 = scmp.lt.s32.totalorder %s29_s13, %s29_s13 }
   0xa   :  { %p232_p3 = scmp.ne.s32.totalorder %s29_s13, %s231_s21  ;;  %p237_p5 = scmp.lt.s32.totalorder %s231_s21, %s231_s21 }
   0xc   :  { %p238_p6 = por %p237_p5, %p236_p4 }
   0xe   :  { %p239_p7 = pnand %p238_p6, %p232_p3 }
  0x10   :  { %242 = shalt.err (!%p239_p7)
}
  0x11   :  { %s316_s22 = smov 128   ;;  %s317_s23 = smov 8  }
  0x12   :  { %34 = dma.hbm_to_vmem [thread:$0]  %s402_s1, 256, %s29_s13, [#allocation6], %s316_s22, %s316_s22, %s317_s23  }
  0x13   :  { %s318_s26 = smov [#allocation2]   ;;  %s243_s30 = scalar_lea.hbm %s401_s0, 128 }
  0x14   :  { %s16_s27 = sshll.u32 %s318_s26, 4  ;;  %p244_p8 = scmp.ne.s32.totalorder %s401_s0, %s243_s30  ;;  %s17_s27 = int_to_ptr.vmem [resolvable:$true] %s16_s27 }
  0x15   :  { %p247_p9 = scmp.lt.u32.totalorder %s243_s30, %s401_s0 }
  0x17   :  { %p249_p10 = pnand %p247_p9, %p244_p8 }
  0x19   :  { %252 = shalt.err (!%p249_p10)
}
  0x1a   :  { %s253_s8 = scalar_lea.vmem %s17_s27, 128  ;;  %p258_p12 = scmp.lt.s32.totalorder %s17_s27, %s17_s27 }
  0x1b   :  { %p254_p11 = scmp.ne.s32.totalorder %s17_s27, %s253_s8  ;;  %p259_p13 = scmp.lt.s32.totalorder %s253_s8, %s253_s8 }
  0x1d   :  { %p260_p0 = por %p259_p13, %p258_p12 }
  0x1f   :  { %p261_p1 = pnand %p260_p0, %p254_p11 }
  0x21   :  { %264 = shalt.err (!%p261_p1)
}
  0x22   :  { %s319_s1 = smov 64   ;;  %s320_s9 = smov 4  }
  0x23   :  { %22 = dma.hbm_to_vmem [thread:$0]  %s401_s0, 128, %s17_s27, [#allocation3], %s319_s1, %s319_s1, %s320_s9  }
  0x24   :  { %s321_s12 = smov [#allocation7]   ;;  %s265_s16 = scalar_lea.hbm %s403_s2, 128 }
  0x25   :  { %s40_s13 = sshll.u32 %s321_s12, 4  ;;  %p266_p2 = scmp.ne.s32.totalorder %s403_s2, %s265_s16  ;;  %s41_s13 = int_to_ptr.vmem [resolvable:$true] %s40_s13 }
  0x26   :  { %p269_p3 = scmp.lt.u32.totalorder %s265_s16, %s403_s2 }
  0x28   :  { %p271_p4 = pnand %p269_p3, %p266_p2 }
  0x2a   :  { %274 = shalt.err (!%p271_p4)
}
  0x2b   :  { %s275_s21 = scalar_lea.vmem %s41_s13, 128  ;;  %p280_p6 = scmp.lt.s32.totalorder %s41_s13, %s41_s13 }
  0x2c   :  { %p276_p5 = scmp.ne.s32.totalorder %s41_s13, %s275_s21  ;;  %p281_p7 = scmp.lt.s32.totalorder %s275_s21, %s275_s21 }
  0x2e   :  { %p282_p8 = por %p281_p7, %p280_p6 }
  0x30   :  { %p283_p9 = pnand %p282_p8, %p276_p5 }
  0x32   :  { %286 = shalt.err (!%p283_p9)
}
  0x33   :  { %46 = dma.hbm_to_vmem [thread:$0]  %s403_s2, 128, %s41_s13, [#allocation6], %s319_s1, %s319_s1, %s320_s9  }
  0x34   :  { %309 = dma.done.wait [#allocation3], 128  }
  0x35   :  { %310 = vsyncadd [#allocation3], 4294967168 }
  0x36   :  { %311 = dma.done.wait [#allocation6], 384  }
  0x37   :  { %312 = vsyncadd [#allocation6], 4294966912  ;;  %v322_v0 = vmov 0.0   ;;  %vm323_vm0 = vmmov 0   ;;  %v324_v1 = vmov 16   ;;  %v215_v2 = vld [vmem:[#allocation7] sm:$0xff]  }
  0x38   :  { %196 = vmatprep.subr.bf16.mxu0 %v322_v0  ;;  %198 = vmatprep.mubr.msk.bf16.mxu0 %vm323_vm0, %v322_v0  ;;  %v216_v3 = vld [vmem:[#allocation2] sm:$0xff]   ;;  %vm74_vm1 = vcmask 130048   ;;  %s325_s25 = smov 120   ;;  %v59_v8 = vld [vmem:[#allocation5] sm:$0xff]  ;;  %v60_v11 = vld [vmem:[#allocation5 + $0x8] sm:$0xff]  ;;  %vm149_vm2 = vcmask 64512  }
  0x39   :  { %214 = vset.pattern.permute.xlu0 %v324_v1  ;;  %197 = vmatpush3.bf16.msra.mxu0 %v215_v2  ;;  %v133_v9 = vmul.f32 2.0, %v59_v8  ;;  %v134_v14 = vmul.f32 2.0, %v60_v11  ;;  %vm170_vm4 = vcmask 7168   ;;  %s326_s2 = smov [#allocation8]  }
  0x3a   :  { %s178_s26 = sshll.u32 %s326_s2, 4  ;;  %s179_s26 = int_to_ptr.vmem [resolvable:$true] %s178_s26 }
  0x3b   :  { %s287_s27 = scalar_lea.vmem %s179_s26, 256  ;;  %p292_p11 = scmp.lt.s32.totalorder %s179_s26, %s179_s26 }
  0x3c   :  { %199 = vmatmul.mubr.msk.bf16.vlgmr.msra.gmra.mrb[0].mxu0 %vm74_vm1, %v216_v3  ;;  %p288_p10 = scmp.ne.s32.totalorder %s179_s26, %s287_s27  ;;  %p293_p12 = scmp.lt.s32.totalorder %s287_s27, %s287_s27 }
  0x3e   :  { %p294_p13 = por %p293_p12, %p292_p11 }
  0x40   :  { %p295_p0 = pnand %p294_p13, %p288_p10 }
 0x10f   :  { %v112_v4 = vpop.f32.mrb[0].mxu0 }
 0x110   :  { %139 = vrot.lane.b32.xlu1 %v112_v4, %s325_s25  ;;  %121 = vperm.xlu0 %214, %v112_v4   ;;  %v200_v5 = vpop.f32.mrb[1].mxu0  ;;  %v135_v15 = vmul.f32 %v133_v9, %v112_v4 }
 0x111   :  { %v115_v6 = vpop.f32.mrb[2].mxu0 }
 0x112   :  { %v201_v7 = vpop.f32.mrb[3].mxu0  ;;  %v136_v22 = vmul.f32 %v134_v14, %v115_v6 }
 0x114   :  { %141 = vrot.lane.b32.xlu1 %v115_v6, %s325_s25  ;;  %126 = vperm.xlu0 %214, %v115_v6  }
 0x182   :  { %v140_v16 = vpop.permute.xlu1 %139 }
 0x186   :  { %v142_v25 = vpop.permute.xlu1 %141 }
 0x18f   :  { %v122_v10 = vpop.permute.xlu0 %121 }
 0x190   :  { %v129_v12 = vmul.f32 %v122_v10, %v59_v8 }
 0x192   :  { %v131_v13 = vmul.f32 %v129_v12, %v59_v8 }
 0x193   :  { %v127_v17 = vpop.permute.xlu0 %126 }
 0x194   :  { %v130_v18 = vmul.f32 %v127_v17, %v60_v11  ;;  %v137_v19 = vsub.f32 %v131_v13, %v135_v15 }
 0x196   :  { %v132_v20 = vmul.f32 %v130_v18, %v60_v11  ;;  %v145_v21 = vadd.f32 %v140_v16, %v137_v19 }
 0x198   :  { %v147_v23 = vmul.f32 %v145_v21, %v145_v21  ;;  %v138_v24 = vsub.f32 %v132_v20, %v136_v22 }
 0x19a   :  { %v150_v26 = vsel %vm149_vm2, %v147_v23, 0.0  ;;  %v146_v27 = vadd.f32 %v142_v25, %v138_v24 }
 0x19b   :  { %151 = vadd.xlane.f32.xlu0 %v150_v26 }
 0x19c   :  { %v148_v28 = vmul.f32 %v146_v27, %v146_v27 }
 0x19e   :  { %v153_v29 = vsel %vm149_vm2, %v148_v28, 0.0 }
 0x19f   :  { %154 = vadd.xlane.f32.xlu1 %v153_v29 }
 0x228   :  { %v152_v30 = vpop.xlane.xlu0 %151 }
 0x229   :  { %217 = vrsqrt.f32 %v152_v30  ;;  %vm158_vm3 = vcmp.eq.f32.partialorder %v152_v30, inf  ;;  %v161_v34 = vand.u32 2147483648, %v152_v30  ;;  %vm160_vm5 = vcmp.eq.f32.partialorder %v152_v30, 0.0 }
 0x22c   :  { %v155_v31 = vpop.xlane.xlu1 %154 }
 0x22d   :  { %219 = vrsqrt.f32 %v155_v31  ;;  %vm165_vm6 = vcmp.eq.f32.partialorder %v155_v31, inf  ;;  %v168_v39 = vand.u32 2147483648, %v155_v31  ;;  %vm167_vm7 = vcmp.eq.f32.partialorder %v155_v31, 0.0 }
 0x233   :  { %v218_v32 = vpop.eup %217 }
 0x234   :  { %v157_v33 = vmul.f32 %v218_v32, %v152_v30 }
 0x236   :  { %v159_v35 = vsel %vm158_vm3, %v152_v30, %v157_v33 }
 0x237   :  { %v220_v36 = vpop.eup %219  ;;  %v162_v37 = vsel %vm160_vm5, %v161_v34, %v159_v35 }
 0x238   :  { %v164_v38 = vmul.f32 %v220_v36, %v155_v31  ;;  %171 = vst.msk [vmem:[#allocation8] sm:$0xff] %vm170_vm4, %v162_v37 }
 0x23a   :  { %v166_v40 = vsel %vm165_vm6, %v155_v31, %v164_v38 }
 0x23b   :  { %v169_v41 = vsel %vm167_vm7, %v168_v39, %v166_v40 }
 0x23c   :  { %172 = vst.msk [vmem:[#allocation8 + $0x8] sm:$0xff] %vm170_vm4, %v169_v41 }
 0x23d   :  { %298 = shalt.err (!%p295_p0)
}
 0x23e   :  { %s299_s30 = scalar_lea.hbm %s404_s3, 256 }
 0x23f   :  { %p300_p1 = scmp.ne.s32.totalorder %s404_s3, %s299_s30  ;;  %p303_p2 = scmp.lt.u32.totalorder %s299_s30, %s404_s3 }
 0x241   :  { %p305_p3 = pnand %p303_p2, %p300_p1 }
 0x243   :  { %308 = shalt.err (!%p305_p3)
}
 0x244   :  { %184 = dma.vmem_to_hbm [thread:$0]  %s179_s26, 256, %s404_s3, [#allocation4], %s316_s22, %s316_s22, %s317_s23  }
 0x245   :  { %313 = dma.done.wait [#allocation4], 256  }
 0x246   :  { %314 = vsyncadd [#allocation4], 4294967040 }
 0x247   :  { %188 = vsyncpa [#allocation3], 1 }
 0x248   :  { %189 = vsyncpa [#allocation6], 1 }
 0x249   :  { %190 = vsyncpa [#allocation4], 1 }

</bundles_post_ra>
